<compile_context>
chip_gen: v7x
topology: tpu7x:2x2x1
jax: 0.10.0
libtpu: 0.0.40
codegen_flags: <defaults>
</compile_context>

<pallas_src>
import math

import jax
import jax.numpy as jnp
import numpy as np
from jax.experimental import pallas as pl
from jax.experimental.pallas import tpu as pltpu


def _round_up(v, m):
    return ((v + m - 1) // m) * m


def _choose_layout(B, A, max_lanes=512):
    """Pick batch-chunk size BC so that L = BC*A is a multiple of 128.

    B no longer has to be divisible by BC -- the wrapper zero-pads the batch.
    Preference: minimal padded batch, then fewer grid steps (fatter blocks).
    For large B this yields nc >= 2, so the 'parallel' grid axis can shard
    across both v7x TensorCores; for small B it keeps padding minimal.
    """
    g = math.gcd(A, 128)
    bc_unit = 128 // g                       # smallest BC giving (BC*A) % 128 == 0
    max_units = max(1, max_lanes // max(1, bc_unit * A))
    best = None
    for k in range(1, max_units + 1):
        bc = bc_unit * k
        nc = -(-B // bc)                     # ceil
        bp = nc * bc
        key = (bp, nc)                       # minimal padding, then fewer steps
        if best is None or key < best[0]:
            best = (key, bc, nc, bp)
    _, BC, nc, Bp = best
    return BC, nc, Bp


def _make_kernel(P1, K1, H2, action_scale):
    def kernel(x_ref, epi_ref, w_ref, out_ref):
        # NOTE: w0 = x[:, :1, :1, :] is sliced but never used in the torch
        # forward, so it is simply ignored here.
        x = x_ref[0]                                      # (K1, L)

        # Static slices into the packed weight slab (row offsets are 8-aligned).
        wbd = w_ref[0:P1, 0:K1]                           # block-diag conv1 W|b (+cb2 carrier)
        w2 = w_ref[P1:P1 + H2, 0:P1]                      # conv2 W (+cb2 folded column)
        w3 = w_ref[P1 + H2:P1 + H2 + 1, 0:H2]             # conv3 channel weights

        # conv1 over the whole (time x channel x kernel) receptive field in
        # one matmul; result lands directly in the (t*H1 + i, lane) layout
        # conv2 contracts over.
        phi1 = jnp.maximum(
            jnp.dot(wbd, x, preferred_element_type=jnp.float32), 0.0)   # (P1, L)

        # conv2 (+ folded bias via phi1's constant-1 row), relu.
        phi2 = jnp.maximum(
            jnp.dot(w2, phi1, preferred_element_type=jnp.float32), 0.0)  # (H2, L)

        # conv3 over phi2 channels; w1 / cb3 epilogue precomputed per lane.
        act = jnp.dot(w3, phi2, preferred_element_type=jnp.float32) + epi_ref[0]

        # action_gate = tanh, then scale; single full-width (unmasked) store.
        out_ref[...] = (action_scale * jnp.tanh(act))[None].astype(out_ref.dtype)

    return kernel


def hierarchical_agent_forward(x, w1, params, action_scale=1.5):
    """x: (B, F, T, A) float32; w1: (B, A+1) float32.  Returns (B, A+1)."""
    B, F, T, A = x.shape
    cw1, cb1, cw2, cb2, cw3, cb3 = params        # PyTorch Conv2d layouts
    H1 = cw1.shape[0]
    H2 = cw2.shape[0]
    KT = cw1.shape[2]                            # conv1 kernel height (3)
    T_IN = T - 1                                 # after x[:, :, 1:, :]
    T1 = T_IN - (KT - 1)                         # stride_time / conv1 out rows
    FK1 = F * KT + 1                             # im2col rows + ones (bias fold)

    BC, nc, Bp = _choose_layout(B, A)
    L = BC * A                                   # lanes per grid step (mult. of 128)

    K1 = _round_up(T1 * FK1, 8)                  # padded x rows (matmul K dim)
    P1 = _round_up(T1 * H1 + 1, 8)               # phi1 rows incl. constant-1 row
    Wc = _round_up(max(K1, P1), 128)             # slab width (lane aligned)
    Rs = _round_up(P1 + H2 + 1, 8)               # slab rows

    x = x.astype(jnp.float32)
    w1 = w1.astype(jnp.float32)

    # ---- x relayout: im2col + ones row, batch folded onto the lane axis ----
    xs = x[:, :, 1:, :]                                          # drop t = 0
    xw = jnp.stack([xs[:, :, t:t + KT, :] for t in range(T1)], axis=1)
    xw = xw.reshape(B, T1, F * KT, A)            # contraction idx = f*KT + dt
    xw = jnp.concatenate(
        [xw, jnp.ones((B, T1, 1, A), jnp.float32)], axis=2)      # per-t ones row
    xw = xw.reshape(B, T1 * FK1, A)
    xw = jnp.pad(xw, ((0, Bp - B), (0, K1 - T1 * FK1), (0, 0)))  # pad batch + K
    xw = xw.reshape(nc, BC, K1, A).transpose(0, 2, 1, 3).reshape(nc, K1, L)

    # ---- conv3 epilogue precomputed per lane: cw3[:,H2]*w1[:, :-1] + cb3 ----
    w3_flat = cw3.astype(jnp.float32).reshape(H2 + 1)
    w3_ch, w3_w1 = w3_flat[:H2], w3_flat[H2]
    epi = w3_w1 * w1[:, :A] + cb3.astype(jnp.float32)[0]         # (B, A)
    epi = jnp.pad(epi, ((0, Bp - B), (0, 0))).reshape(nc, 1, L)

    # ---- single packed weight slab --------------------------------------
    cw1_k = jnp.concatenate(
        [cw1.astype(jnp.float32).reshape(H1, F * KT),
         cb1.astype(jnp.float32).reshape(H1, 1)], axis=1)        # (H1, FK1)
    cw2_k = jnp.transpose(cw2.astype(jnp.float32)[:, :, :, 0],
                          (0, 2, 1)).reshape(H2, T1 * H1)        # col = t*H1 + i

    slab = jnp.zeros((Rs, Wc), jnp.float32)
    for t in range(T1):                                          # block diagonal
        slab = slab.at[t * H1:(t + 1) * H1,
                       t * FK1:(t + 1) * FK1].set(cw1_k)
    # carrier row: picks up x's last ones row so phi1[T1*H1] == 1 everywhere
    slab = slab.at[T1 * H1, (T1 - 1) * FK1 + F * KT].set(1.0)
    slab = slab.at[P1:P1 + H2, 0:T1 * H1].set(cw2_k)             # conv2 weights
    slab = slab.at[P1:P1 + H2, T1 * H1].set(cb2.astype(jnp.float32))  # folded cb2
    slab = slab.at[P1 + H2, 0:H2].set(w3_ch)                     # conv3 channels

    kernel = _make_kernel(P1, K1, H2, action_scale)
    out = pl.pallas_call(
        kernel,
        out_shape=jax.ShapeDtypeStruct((nc, 1, L), jnp.float32),
        grid_spec=pltpu.PrefetchScalarGridSpec(
            num_scalar_prefetch=0,
            grid=(nc,),
            in_specs=[
                pl.BlockSpec((1, K1, L), lambda c: (c, 0, 0)),   # x (im2col)
                pl.BlockSpec((1, 1, L), lambda c: (c, 0, 0)),    # conv3 epilogue
                pl.BlockSpec((Rs, Wc), lambda c: (0, 0)),        # weight slab
            ],
            out_specs=pl.BlockSpec((1, 1, L), lambda c: (c, 0, 0)),
        ),
        compiler_params=pltpu.CompilerParams(
            dimension_semantics=("parallel",)),
    )(xw, epi, slab)

    gated = out.reshape(Bp, A)[:B]
    # cash-bias column = 0 ; action_scale * tanh(0) == 0
    return jnp.concatenate([jnp.zeros((B, 1), jnp.float32), gated], axis=1)


def reference_forward(x, w1, params, action_scale=1.5):
    """Pure-JAX reference mirroring the PyTorch forward exactly."""
    cw1, cb1, cw2, cb2, cw3, cb3 = params
    T = x.shape[2]
    T1 = T - 3
    dn = ("NCHW", "OIHW", "NCHW")
    xs = x[:, :, 1:, :]
    phi1 = jax.lax.conv_general_dilated(xs, cw1, (1, 1), "VALID",
                                        dimension_numbers=dn)
    phi1 = jnp.maximum(phi1 + cb1[None, :, None, None], 0.0)
    phi2 = jax.lax.conv_general_dilated(phi1, cw2, (T1, 1), "VALID",
                                        dimension_numbers=dn)
    phi2 = jnp.maximum(phi2 + cb2[None, :, None, None], 0.0)
    h = jnp.concatenate([phi2, w1[:, None, None, :-1]], axis=1)
    act = jax.lax.conv_general_dilated(h, cw3, (1, 1), "VALID",
                                       dimension_numbers=dn)
    act = act + cb3[None, :, None, None]
    act = jnp.concatenate([jnp.zeros_like(act[:, :, :, :1]), act], axis=-1)
    act = act.reshape(act.shape[0], -1)
    return action_scale * jnp.tanh(act)


if __name__ == "__main__":
    # Shapes consistent with the module: features=4, T=state_dim[1]=8,
    # assets=8, batch=2.  stride_time = T - 3 = 5, h1=32, h2=16.
    B, F, T, A = 2, 4, 8, 8
    H1, H2 = 32, 16
    T1 = T - 3
    ACTION_SCALE = 1.5   # action_gate = tanh, action_scale = 1.5

    key = jax.random.PRNGKey(0)
    kx, kw, k1, k2, k3, k4, k5, k6 = jax.random.split(key, 8)
    x = jax.random.normal(kx, (B, F, T, A), jnp.float32)
    w1 = jax.random.normal(kw, (B, A + 1), jnp.float32)

    # Deterministic synthetic parameters in PyTorch Conv2d layouts (O, I, kH, kW).
    params = (
        0.1 * jax.random.normal(k1, (H1, F, 3, 1), jnp.float32),
        0.1 * jax.random.normal(k2, (H1,), jnp.float32),
        0.1 * jax.random.normal(k3, (H2, H1, T1, 1), jnp.float32),
        0.1 * jax.random.normal(k4, (H2,), jnp.float32),
        0.1 * jax.random.normal(k5, (1, H2 + 1, 1, 1), jnp.float32),
        0.1 * jax.random.normal(k6, (1,), jnp.float32),
    )
    # TODO(synk): batch_norm branch of the module is off by default and not implemented.

    out = jax.block_until_ready(
        hierarchical_agent_forward(x, w1, params, ACTION_SCALE))
    ref = jax.block_until_ready(
        reference_forward(x, w1, params, ACTION_SCALE))

    assert out.shape == (B, A + 1)
    np.testing.assert_allclose(np.asarray(out), np.asarray(ref),
                               rtol=1e-5, atol=1e-5)
    print("KERNEL_OK")
</pallas_src>

<mosaic_0001>
module attributes {stable_mosaic.version = 11 : i64} {
  func.func @kernel(%arg0: i32, %arg1: memref<1x72x128xf32, #tpu.memory_space<vmem>>, %arg2: memref<1x1x128xf32, #tpu.memory_space<vmem>>, %arg3: memref<192x256xf32, #tpu.memory_space<vmem>>, %arg4: memref<1x1x128xf32, #tpu.memory_space<vmem>>) attributes {dimension_semantics = [#tpu.dimension_semantics<parallel>], iteration_bounds = array<i64: 1>, scalar_prefetch = 0 : i64, scratch_operands = 0 : i64, tpu.core_type = #tpu.core_type<tc>, window_params = [{transform_indices = @transform_0, window_bounds = array<i64: 1, 72, 128>}, {transform_indices = @transform_1, window_bounds = array<i64: 1, 1, 128>}, {pipeline_mode = #tpu.pipeline_mode<synchronous>, transform_indices = @transform_2, window_bounds = array<i64: 192, 256>}, {transform_indices = @transform_3, window_bounds = array<i64: 1, 1, 128>}]} {
    %c0 = arith.constant 0 : index
    %c0_0 = arith.constant 0 : index
    %c0_1 = arith.constant 0 : index
    %0 = vector.load %arg1[%c0, %c0_0, %c0_1] : memref<1x72x128xf32, #tpu.memory_space<vmem>>, vector<1x72x128xf32>
    %1 = vector.shape_cast %0 : vector<1x72x128xf32> to vector<72x128xf32>
    %c0_2 = arith.constant 0 : index
    %c0_3 = arith.constant 0 : index
    %2 = vector.load %arg3[%c0_2, %c0_3] : memref<192x256xf32, #tpu.memory_space<vmem>>, vector<168x72xf32>
    %c168 = arith.constant 168 : index
    %c0_4 = arith.constant 0 : index
    %3 = vector.load %arg3[%c168, %c0_4] : memref<192x256xf32, #tpu.memory_space<vmem>>, vector<16x168xf32>
    %c184 = arith.constant 184 : index
    %c0_5 = arith.constant 0 : index
    %4 = vector.load %arg3[%c184, %c0_5] : memref<192x256xf32, #tpu.memory_space<vmem>>, vector<1x16xf32>
    %cst = arith.constant dense<0.000000e+00> : vector<168x128xf32>
    %5 = tpu.matmul %2, %1, %cst {dimension_numbers = #tpu.dot_dimension_numbers<[1], [0], [0], [1], [0, 0, 1, 1], [], []>} : vector<168x72xf32>, vector<72x128xf32>, vector<168x128xf32> -> vector<168x128xf32>
    %cst_6 = arith.constant 0.000000e+00 : f32
    %6 = vector.broadcast %cst_6 : f32 to vector<168x128xf32>
    %7 = arith.maximumf %5, %6 : vector<168x128xf32>
    %cst_7 = arith.constant dense<0.000000e+00> : vector<16x128xf32>
    %8 = tpu.matmul %3, %7, %cst_7 {dimension_numbers = #tpu.dot_dimension_numbers<[1], [0], [0], [1], [0, 0, 1, 1], [], []>} : vector<16x168xf32>, vector<168x128xf32>, vector<16x128xf32> -> vector<16x128xf32>
    %cst_8 = arith.constant 0.000000e+00 : f32
    %9 = vector.broadcast %cst_8 : f32 to vector<16x128xf32>
    %10 = arith.maximumf %8, %9 : vector<16x128xf32>
    %cst_9 = arith.constant dense<0.000000e+00> : vector<1x128xf32>
    %11 = tpu.matmul %4, %10, %cst_9 {dimension_numbers = #tpu.dot_dimension_numbers<[1], [0], [0], [1], [0, 0, 1, 1], [], []>} : vector<1x16xf32>, vector<16x128xf32>, vector<1x128xf32> -> vector<1x128xf32>
    %c0_10 = arith.constant 0 : index
    %c0_11 = arith.constant 0 : index
    %c0_12 = arith.constant 0 : index
    %12 = vector.load %arg2[%c0_10, %c0_11, %c0_12] : memref<1x1x128xf32, #tpu.memory_space<vmem>>, vector<1x1x128xf32>
    %13 = vector.shape_cast %12 : vector<1x1x128xf32> to vector<1x128xf32>
    %14 = arith.addf %11, %13 : vector<1x128xf32>
    %15 = math.tanh %14 : vector<1x128xf32>
    %cst_13 = arith.constant 1.500000e+00 : f32
    %16 = vector.broadcast %cst_13 : f32 to vector<1x128xf32>
    %17 = arith.mulf %16, %15 : vector<1x128xf32>
    %18 = vector.shape_cast %17 : vector<1x128xf32> to vector<1x1x128xf32>
    %c0_14 = arith.constant 0 : index
    %c0_15 = arith.constant 0 : index
    %c0_16 = arith.constant 0 : index
    %19 = vector.load %arg4[%c0_14, %c0_15, %c0_16] : memref<1x1x128xf32, #tpu.memory_space<vmem>>, vector<1x1x128xf32>
    tpu.vector_store %arg4[%c0_14, %c0_15, %c0_16], %18 {strides = array<i32>} : memref<1x1x128xf32, #tpu.memory_space<vmem>>, vector<1x1x128xf32>,
    return
  }
  func.func @transform_0(%arg0: i32) -> (i32, i32, i32) {
    %c0_i32 = arith.constant 0 : i32
    %c0_i32_0 = arith.constant 0 : i32
    %c0_i32_1 = arith.constant 0 : i32
    return %arg0, %c0_i32, %c0_i32_0 : i32, i32, i32
  }
  func.func @transform_1(%arg0: i32) -> (i32, i32, i32) {
    %c0_i32 = arith.constant 0 : i32
    %c0_i32_0 = arith.constant 0 : i32
    %c0_i32_1 = arith.constant 0 : i32
    return %arg0, %c0_i32, %c0_i32_0 : i32, i32, i32
  }
  func.func @transform_2(%arg0: i32) -> (i32, i32) {
    %c0_i32 = arith.constant 0 : i32
    %c0_i32_0 = arith.constant 0 : i32
    %c0_i32_1 = arith.constant 0 : i32
    return %c0_i32, %c0_i32_0 : i32, i32
  }
  func.func @transform_3(%arg0: i32) -> (i32, i32, i32) {
    %c0_i32 = arith.constant 0 : i32
    %c0_i32_0 = arith.constant 0 : i32
    %c0_i32_1 = arith.constant 0 : i32
    return %arg0, %c0_i32, %c0_i32_0 : i32, i32, i32
  }
}

</mosaic_0001>

<bundles_post_ra>
// kernel: tpu_custom_call.1
= control target key start
LH: loop header
LB: loop body
LE: loop exit
PB: predicated region body
PF: predicated region fallthrough
CT: control target
= control target key end

     0   :  { %8 = vsyncpa [#allocation3], 0  ;;  %s938_s0 = inlined_call_operand.hbm [shape: f32[1,72,128], index: 0, kind: input, shape index: {}]   ;;  %s939_s1 = inlined_call_operand.vmem [shape: f32[1,1,128], index: 1, kind: input, shape index: {}]   ;;  %s940_s2 = inlined_call_operand.hbm [shape: f32[192,256], index: 2, kind: input, shape index: {}]   ;;  %s941_s3 = inlined_call_operand.hbm [shape: f32[1,1,128], index: 3, kind: output, shape index: {}]  }
   0x1   :  { %9 = vsyncpa [#allocation6], 0 }
   0x2   :  { %10 = vsyncpa [#allocation4], 0  ;;  %s785_s12 = smov [#allocation2]   ;;  %s713_s16 = scalar_lea.hbm %s938_s0, 1152 }
   0x3   :  { %s16_s13 = sshll.u32 %s785_s12, 4  ;;  %p714_p0 = scmp.ne.s32.totalorder %s938_s0, %s713_s16  ;;  %s17_s13 = int_to_ptr.vmem [resolvable:$true] %s16_s13 }
   0x4   :  { %p717_p1 = scmp.lt.u32.totalorder %s713_s16, %s938_s0 }
   0x6   :  { %p719_p2 = pnand %p717_p1, %p714_p0 }
   0x8   :  { %722 = shalt.err (!%p719_p2)
}
   0x9   :  { %s723_s21 = scalar_lea.vmem %s17_s13, 1152  ;;  %p728_p4 = scmp.lt.s32.totalorder %s17_s13, %s17_s13 }
   0xa   :  { %p724_p3 = scmp.ne.s32.totalorder %s17_s13, %s723_s21  ;;  %p729_p5 = scmp.lt.s32.totalorder %s723_s21, %s723_s21 }
   0xc   :  { %p730_p6 = por %p729_p5, %p728_p4 }
   0xe   :  { %p731_p7 = pnand %p730_p6, %p724_p3 }
  0x10   :  { %734 = shalt.err (!%p731_p7)
}
  0x11   :  { %s786_s22 = smov 128   ;;  %s787_s23 = smov 8  }
  0x12   :  { %22 = dma.hbm_to_vmem [thread:$0]  %s938_s0, 1152, %s17_s13, [#allocation3], %s786_s22, %s786_s22, %s787_s23  }
  0x13   :  { %s788_s26 = smov [#allocation5]   ;;  %s735_s30 = scalar_lea.hbm %s940_s2, 6144 }
  0x14   :  { %s30_s27 = sshll.u32 %s788_s26, 4  ;;  %p736_p8 = scmp.ne.s32.totalorder %s940_s2, %s735_s30  ;;  %s31_s27 = int_to_ptr.vmem [resolvable:$true] %s30_s27 }
  0x15   :  { %p739_p9 = scmp.lt.u32.totalorder %s735_s30, %s940_s2 }
  0x17   :  { %p741_p10 = pnand %p739_p9, %p736_p8 }
  0x19   :  { %744 = shalt.err (!%p741_p10)
}
  0x1a   :  { %s745_s8 = scalar_lea.vmem %s31_s27, 6144  ;;  %p750_p12 = scmp.lt.s32.totalorder %s31_s27, %s31_s27 }
  0x1b   :  { %p746_p11 = scmp.ne.s32.totalorder %s31_s27, %s745_s8  ;;  %p751_p13 = scmp.lt.s32.totalorder %s745_s8, %s745_s8 }
  0x1d   :  { %p752_p0 = por %p751_p13, %p750_p12 }
  0x1f   :  { %p753_p1 = pnand %p752_p0, %p746_p11 }
  0x21   :  { %756 = shalt.err (!%p753_p1)
}
  0x22   :  { %s789_s0 = smov 256   ;;  %s790_s9 = smov 16  }
  0x23   :  { %36 = dma.hbm_to_vmem [thread:$0]  %s940_s2, 6144, %s31_s27, [#allocation6], %s789_s0, %s789_s0, %s790_s9  }
  0x24   :  { %779 = dma.done.wait [#allocation3], 1152  }
  0x25   :  { %780 = vsyncadd [#allocation3], 4294966144 }
  0x26   :  { %781 = dma.done.wait [#allocation6], 6144  }
  0x27   :  { %782 = vsyncadd [#allocation6], 4294961152  ;;  %v791_v0 = vmov 0.0|0.0   ;;  %vm792_vm0 = vmmov 0   ;;  %v793_v1 = vmov 0.0   ;;  %v43_v2 = vld [vmem:[#allocation2] sm:$0xff] }
  0x28   :  { %656 = vmatprep.subr.bf16.mxu0 %v791_v0  ;;  %586 = vmatprep.mubr.msk.f32.mxu0 %vm792_vm0, %v793_v1  ;;  %v44_v3 = vld [vmem:[#allocation2 + $0x8] sm:$0xff]  ;;  %v45_v4 = vld [vmem:[#allocation2 + $0x10] sm:$0xff]  ;;  %v46_v6 = vld [vmem:[#allocation2 + $0x18] sm:$0xff]  ;;  %vm78_vm1 = vcmask 588800   ;;  %vm333_vm2 = vcmask 326656   ;;  %vm418_vm3 = vcmask 130048  }
  0x29   :  { %668 = vmatprep.subr.bf16.mxu1 %v791_v0  ;;  %v657_v5 = vpack.c.bf16 %v44_v3, %v43_v2  ;;  %v660_v7 = vpack.c.bf16 %v46_v6, %v45_v4  ;;  %v47_v8 = vld [vmem:[#allocation2 + $0x20] sm:$0xff]  ;;  %v48_v9 = vld [vmem:[#allocation2 + $0x28] sm:$0xff]  ;;  %v49_v11 = vld [vmem:[#allocation2 + $0x30] sm:$0xff]  ;;  %s794_s13 = smov [#allocation7]  }
  0x2a   :  { %v663_v10 = vpack.c.bf16 %v48_v9, %v47_v8  ;;  %v50_v12 = vld [vmem:[#allocation2 + $0x38] sm:$0xff]  ;;  %v51_v14 = vld [vmem:[#allocation2 + $0x40] sm:$0xff]  ;;  %v52_v15 = vld [vmem:[#allocation5] sm:$0xff]  ;;  %s501_s14 = sshll.u32 %s794_s13, 4  ;;  %s502_s14 = int_to_ptr.vmem [resolvable:$true] %s501_s14 }
  0x2b   :  { %658 = vmatpush3.bf16.msra.mxu0 %v657_v5  ;;  %v666_v13 = vpack.c.bf16 %v50_v12, %v49_v11  ;;  %v53_v16 = vld [vmem:[#allocation5 + $0x10] sm:$0xff]  ;;  %v54_v17 = vld [vmem:[#allocation5 + $0x20] sm:$0xff]  ;;  %v74_v36 = vld [vmem:[#allocation5 + $0x158] sm:$0xff]  ;;  %s757_s15 = scalar_lea.vmem %s502_s14, 16  ;;  %s761_s16 = scalar_lea.vmem %s502_s14, 32 }
  0x2c   :  { %659 = vmatprep.subr.bf16.mxu0 %v791_v0  ;;  %v55_v18 = vld [vmem:[#allocation5 + $0x30] sm:$0xff]  ;;  %v56_v19 = vld [vmem:[#allocation5 + $0x40] sm:$0xff]  ;;  %532 = vmatprep.mubr.msk.f32.mxu1 %vm333_vm2, %v74_v36  ;;  %p758_p2 = scmp.ne.s32.totalorder %s502_s14, %s757_s15  ;;  %p762_p3 = scmp.lt.s32.totalorder %s502_s14, %s502_s14 }
  0x2d   :  { %v57_v20 = vld [vmem:[#allocation5 + $0x50] sm:$0xff]  ;;  %v58_v21 = vld [vmem:[#allocation5 + $0x60] sm:$0xff]  ;;  %p763_p4 = scmp.lt.s32.totalorder %s761_s16, %s757_s15 }
  0x2e   :  { %v59_v22 = vld [vmem:[#allocation5 + $0x70] sm:$0xff]  ;;  %v60_v23 = vld [vmem:[#allocation5 + $0x80] sm:$0xff] }
  0x2f   :  { %661 = vmatpush3.bf16.msra.mxu0 %v660_v7  ;;  %v61_v24 = vld [vmem:[#allocation5 + $0x90] sm:$0xff]  ;;  %v62_v25 = vld [vmem:[#allocation5 + $0xa0] sm:$0xff]  ;;  %p764_p5 = por %p763_p4, %p762_p3 }
  0x30   :  { %662 = vmatprep.subr.bf16.mxu0 %v791_v0  ;;  %v63_v26 = vld [vmem:[#allocation5 + $0xb0] sm:$0xff]  ;;  %v64_v27 = vld [vmem:[#allocation5 + $0xc0] sm:$0xff] }
  0x31   :  { %v65_v28 = vld [vmem:[#allocation5 + $0xd0] sm:$0xff]  ;;  %v66_v29 = vld [vmem:[#allocation5 + $0xe0] sm:$0xff]  ;;  %p765_p6 = pnand %p764_p5, %p758_p2 }
  0x32   :  { %v67_v30 = vld [vmem:[#allocation5 + $0xf0] sm:$0xff]  ;;  %v68_v31 = vld [vmem:[#allocation5 + $0x100] sm:$0xff] }
  0x33   :  { %664 = vmatpush3.bf16.msra.mxu0 %v663_v10  ;;  %v69_v32 = vld [vmem:[#allocation5 + $0x110] sm:$0xff]  ;;  %v70_v33 = vld [vmem:[#allocation5 + $0x120] sm:$0xff] }
  0x34   :  { %665 = vmatprep.subr.bf16.mxu0 %v791_v0  ;;  %v71_v34 = vld [vmem:[#allocation5 + $0x130] sm:$0xff]  ;;  %v72_v35 = vld [vmem:[#allocation5 + $0x140] sm:$0xff] }
  0x37   :  { %667 = vmatpush3.bf16.msra.mxu0 %v666_v13 }
  0x38   :  { %584 = vmatprep.subr.mxu0 %v793_v1 }
  0x3b   :  { %585 = vmatpush3.msra.mxu0 %v51_v14 }
  0x3c   :  { %587 = vmatmul.mubr.msk.f32.vlgmr.msra.gmra.mrb[0].mxu0 %vm78_vm1, %v52_v15 }
  0x3d   :  { %589 = vmatprep.mubr.msk.f32.mxu0 %vm792_vm0, %v793_v1 }
  0x40   :  { %590 = vmatmul.mubr.msk.f32.gmra.mrb[2].mxu0 %vm78_vm1, %v53_v16 }
  0x41   :  { %592 = vmatprep.mubr.msk.f32.mxu0 %vm792_vm0, %v793_v1 }
  0x44   :  { %593 = vmatmul.mubr.msk.f32.gmra.mrb[4].mxu0 %vm78_vm1, %v54_v17 }
  0x45   :  { %595 = vmatprep.mubr.msk.f32.mxu0 %vm792_vm0, %v793_v1 }
  0x48   :  { %596 = vmatmul.mubr.msk.f32.gmra.mrb[6].mxu0 %vm78_vm1, %v55_v18 }
  0x49   :  { %598 = vmatprep.mubr.msk.f32.mxu0 %vm792_vm0, %v793_v1 }
  0x4c   :  { %599 = vmatmul.mubr.msk.f32.gmra.mrb[8].mxu0 %vm78_vm1, %v56_v19 }
  0x4d   :  { %601 = vmatprep.mubr.msk.f32.mxu0 %vm792_vm0, %v793_v1 }
  0x50   :  { %602 = vmatmul.mubr.msk.f32.gmra.mrb[10].mxu0 %vm78_vm1, %v57_v20 }
  0x51   :  { %604 = vmatprep.mubr.msk.f32.mxu0 %vm792_vm0, %v793_v1 }
  0x54   :  { %605 = vmatmul.mubr.msk.f32.gmra.mrb[12].mxu0 %vm78_vm1, %v58_v21 }
  0x55   :  { %607 = vmatprep.mubr.msk.f32.mxu0 %vm792_vm0, %v793_v1 }
  0x58   :  { %608 = vmatmul.mubr.msk.f32.gmra.mrb[14].mxu0 %vm78_vm1, %v59_v22 }
  0x59   :  { %610 = vmatprep.mubr.msk.f32.mxu0 %vm792_vm0, %v793_v1 }
  0x5c   :  { %611 = vmatmul.mubr.msk.f32.gmra.mrb[16].mxu0 %vm78_vm1, %v60_v23 }
  0x5d   :  { %613 = vmatprep.mubr.msk.f32.mxu0 %vm792_vm0, %v793_v1 }
  0x60   :  { %614 = vmatmul.mubr.msk.f32.gmra.mrb[18].mxu0 %vm78_vm1, %v61_v24 }
  0x61   :  { %616 = vmatprep.mubr.msk.f32.mxu0 %vm792_vm0, %v793_v1 }
  0x64   :  { %617 = vmatmul.mubr.msk.f32.gmra.mrb[20].mxu0 %vm78_vm1, %v62_v25 }
  0x65   :  { %619 = vmatprep.mubr.msk.f32.mxu0 %vm792_vm0, %v793_v1 }
  0x68   :  { %620 = vmatmul.mubr.msk.f32.gmra.mrb[22].mxu0 %vm78_vm1, %v63_v26 }
  0x69   :  { %622 = vmatprep.mubr.msk.f32.mxu0 %vm792_vm0, %v793_v1 }
  0x6c   :  { %623 = vmatmul.mubr.msk.f32.gmra.mrb[24].mxu0 %vm78_vm1, %v64_v27 }
  0x6d   :  { %625 = vmatprep.mubr.msk.f32.mxu0 %vm792_vm0, %v793_v1 }
  0x70   :  { %626 = vmatmul.mubr.msk.f32.gmra.mrb[26].mxu0 %vm78_vm1, %v65_v28 }
  0x71   :  { %628 = vmatprep.mubr.msk.f32.mxu0 %vm792_vm0, %v793_v1 }
  0x74   :  { %629 = vmatmul.mubr.msk.f32.gmra.mrb[28].mxu0 %vm78_vm1, %v66_v29 }
  0x75   :  { %631 = vmatprep.mubr.msk.f32.mxu0 %vm792_vm0, %v793_v1 }
  0x78   :  { %632 = vmatmul.mubr.msk.f32.gmra.mrb[30].mxu0 %vm78_vm1, %v67_v30 }
  0x79   :  { %634 = vmatprep.mubr.msk.f32.mxu0 %vm792_vm0, %v793_v1 }
  0x7c   :  { %635 = vmatmul.mubr.msk.f32.gmra.mrb[32].mxu0 %vm78_vm1, %v68_v31 }
  0x7d   :  { %637 = vmatprep.mubr.msk.f32.mxu0 %vm792_vm0, %v793_v1 }
  0x80   :  { %638 = vmatmul.mubr.msk.f32.gmra.mrb[34].mxu0 %vm78_vm1, %v69_v32 }
  0x81   :  { %640 = vmatprep.mubr.msk.f32.mxu0 %vm792_vm0, %v793_v1 }
  0x84   :  { %641 = vmatmul.mubr.msk.f32.gmra.mrb[36].mxu0 %vm78_vm1, %v70_v33 }
  0x85   :  { %643 = vmatprep.mubr.msk.f32.mxu0 %vm792_vm0, %v793_v1 }
  0x88   :  { %644 = vmatmul.mubr.msk.f32.gmra.mrb[38].mxu0 %vm78_vm1, %v71_v34 }
  0x89   :  { %646 = vmatprep.mubr.msk.f32.mxu0 %vm792_vm0, %v793_v1 }
  0x8c   :  { %647 = vmatmul.mubr.msk.f32.gmra.mrb[40].mxu0 %vm78_vm1, %v72_v35 }
 0x10f   :  { %v208_v37 = vpop.f32.mrb[0].mxu0 }
 0x110   :  { %v588_v38 = vpop.f32.mrb[1].mxu0  ;;  %v312_v40 = vmax.f32 %v208_v37, 0.0 }
 0x113   :  { %v213_v39 = vpop.f32.mrb[2].mxu0 }
 0x114   :  { %v313_v41 = vmax.f32 %v213_v39, 0.0  ;;  %v591_v42 = vpop.f32.mrb[3].mxu0 }
 0x116   :  { %v669_v43 = vpack.c.bf16 %v313_v41, %v312_v40 }
 0x117   :  { %v218_v44 = vpop.f32.mrb[4].mxu0 }
 0x118   :  { %v594_v45 = vpop.f32.mrb[5].mxu0  ;;  %670 = vmatpush1.bf16.msra.mxu1 %v669_v43  ;;  %v314_v47 = vmax.f32 %v218_v44, 0.0 }
 0x119   :  { %671 = vmatprep.subr.bf16.mxu1 %v791_v0 }
 0x11b   :  { %v223_v46 = vpop.f32.mrb[6].mxu0 }
 0x11c   :  { %v315_v48 = vmax.f32 %v223_v46, 0.0  ;;  %v597_v49 = vpop.f32.mrb[7].mxu0 }
 0x11d   :  { %v76_v49 = vld [vmem:[#allocation5 + $0x168] sm:$0xff] }
 0x11e   :  { %v672_v50 = vpack.c.bf16 %v315_v48, %v314_v47  ;;  %v73_v48 = vld [vmem:[#allocation5 + $0x150] sm:$0xff] }
 0x11f   :  { %v228_v51 = vpop.f32.mrb[8].mxu0 }
 0x120   :  { %v600_v52 = vpop.f32.mrb[9].mxu0  ;;  %673 = vmatpush1.bf16.msra.mxu1 %v672_v50  ;;  %v316_v54 = vmax.f32 %v228_v51, 0.0  ;;  %v75_v50 = vld [vmem:[#allocation5 + $0x160] sm:$0xff] }
 0x121   :  { %674 = vmatprep.subr.bf16.mxu1 %v791_v0 }
 0x123   :  { %v233_v53 = vpop.f32.mrb[10].mxu0 }
 0x124   :  { %v317_v55 = vmax.f32 %v233_v53, 0.0  ;;  %v603_v56 = vpop.f32.mrb[11].mxu0 }
 0x126   :  { %v675_v57 = vpack.c.bf16 %v317_v55, %v316_v54 }
 0x127   :  { %v238_v58 = vpop.f32.mrb[12].mxu0 }
 0x128   :  { %v606_v59 = vpop.f32.mrb[13].mxu0  ;;  %676 = vmatpush1.bf16.msra.mxu1 %v675_v57  ;;  %v318_v61 = vmax.f32 %v238_v58, 0.0  ;;  %v77_v58 = vld [vmem:[#allocation5 + $0x170] ss:$0 sm:$0xff] }
 0x129   :  { %677 = vmatprep.subr.bf16.mxu1 %v791_v0 }
 0x12b   :  { %v243_v60 = vpop.f32.mrb[14].mxu0 }
 0x12c   :  { %v319_v62 = vmax.f32 %v243_v60, 0.0  ;;  %v609_v63 = vpop.f32.mrb[15].mxu0 }
 0x12e   :  { %v678_v2 = vpack.c.bf16 %v319_v62, %v318_v61 }
 0x12f   :  { %v248_v3 = vpop.f32.mrb[16].mxu0 }
 0x130   :  { %v612_v4 = vpop.f32.mrb[17].mxu0  ;;  %679 = vmatpush1.bf16.msra.mxu1 %v678_v2  ;;  %v320_v6 = vmax.f32 %v248_v3, 0.0 }
 0x131   :  { %680 = vmatprep.subr.bf16.mxu1 %v791_v0 }
 0x133   :  { %v253_v5 = vpop.f32.mrb[18].mxu0 }
 0x134   :  { %v321_v7 = vmax.f32 %v253_v5, 0.0  ;;  %v615_v8 = vpop.f32.mrb[19].mxu0 }
 0x136   :  { %v681_v9 = vpack.c.bf16 %v321_v7, %v320_v6 }
 0x137   :  { %v258_v10 = vpop.f32.mrb[20].mxu0 }
 0x138   :  { %v618_v11 = vpop.f32.mrb[21].mxu0  ;;  %682 = vmatpush1.bf16.msra.mxu1 %v681_v9  ;;  %v322_v13 = vmax.f32 %v258_v10, 0.0 }
 0x139   :  { %683 = vmatprep.subr.bf16.mxu1 %v791_v0 }
 0x13b   :  { %v263_v12 = vpop.f32.mrb[22].mxu0 }
 0x13c   :  { %v323_v14 = vmax.f32 %v263_v12, 0.0  ;;  %v621_v15 = vpop.f32.mrb[23].mxu0 }
 0x13e   :  { %v684_v16 = vpack.c.bf16 %v323_v14, %v322_v13 }
 0x13f   :  { %v268_v17 = vpop.f32.mrb[24].mxu0 }
 0x140   :  { %v624_v18 = vpop.f32.mrb[25].mxu0  ;;  %685 = vmatpush1.bf16.msra.mxu1 %v684_v16  ;;  %v324_v20 = vmax.f32 %v268_v17, 0.0 }
 0x141   :  { %686 = vmatprep.subr.bf16.mxu1 %v791_v0 }
 0x143   :  { %v273_v19 = vpop.f32.mrb[26].mxu0 }
 0x144   :  { %v325_v21 = vmax.f32 %v273_v19, 0.0  ;;  %v627_v22 = vpop.f32.mrb[27].mxu0 }
 0x146   :  { %v687_v23 = vpack.c.bf16 %v325_v21, %v324_v20 }
 0x147   :  { %v278_v24 = vpop.f32.mrb[28].mxu0 }
 0x148   :  { %v630_v25 = vpop.f32.mrb[29].mxu0  ;;  %688 = vmatpush1.bf16.msra.mxu1 %v687_v23  ;;  %v326_v27 = vmax.f32 %v278_v24, 0.0 }
 0x149   :  { %689 = vmatprep.subr.bf16.mxu1 %v791_v0 }
 0x14b   :  { %v283_v26 = vpop.f32.mrb[30].mxu0 }
 0x14c   :  { %v327_v28 = vmax.f32 %v283_v26, 0.0  ;;  %v633_v29 = vpop.f32.mrb[31].mxu0 }
 0x14e   :  { %v690_v30 = vpack.c.bf16 %v327_v28, %v326_v27 }
 0x14f   :  { %v288_v31 = vpop.f32.mrb[32].mxu0 }
 0x150   :  { %v636_v32 = vpop.f32.mrb[33].mxu0  ;;  %691 = vmatpush1.bf16.msra.mxu1 %v690_v30  ;;  %v328_v34 = vmax.f32 %v288_v31, 0.0 }
 0x151   :  { %692 = vmatprep.subr.bf16.mxu1 %v791_v0 }
 0x153   :  { %v293_v33 = vpop.f32.mrb[34].mxu0 }
 0x154   :  { %v329_v35 = vmax.f32 %v293_v33, 0.0  ;;  %v639_v36 = vpop.f32.mrb[35].mxu0 }
 0x156   :  { %v693_v37 = vpack.c.bf16 %v329_v35, %v328_v34 }
 0x157   :  { %v298_v38 = vpop.f32.mrb[36].mxu0 }
 0x158   :  { %v642_v39 = vpop.f32.mrb[37].mxu0  ;;  %694 = vmatpush1.bf16.msra.mxu1 %v693_v37  ;;  %v330_v41 = vmax.f32 %v298_v38, 0.0 }
 0x159   :  { %695 = vmatprep.subr.bf16.mxu1 %v791_v0 }
 0x15b   :  { %v303_v40 = vpop.f32.mrb[38].mxu0 }
 0x15c   :  { %v331_v42 = vmax.f32 %v303_v40, 0.0  ;;  %v645_v43 = vpop.f32.mrb[39].mxu0 }
 0x15e   :  { %v696_v44 = vpack.c.bf16 %v331_v42, %v330_v41 }
 0x15f   :  { %v308_v45 = vpop.f32.mrb[40].mxu0 }
 0x160   :  { %v332_v46 = vmax.f32 %v308_v45, 0.0  ;;  %697 = vmatpush1.bf16.msra.mxu1 %v696_v44  ;;  %v648_v47 = vpop.f32.mrb[41].mxu0 }
 0x161   :  { %380 = vmatprep.subr.mxu1 %v793_v1 }
 0x164   :  { %381 = vmatpush1.msra.mxu1 %v332_v46 }
 0x165   :  { %405 = vmatmul.mubr.f32.vlgmr.msra.gmra.mrb[0].mxu1 %v73_v48  ;;  %698 = vmatprep.subr.bf16.mxu1 %v791_v0  ;;  %v417_v0 = vld [vmem:[%s939_s1] sm:$0x1] }
 0x166   :  { %533 = vmatprep.mubr.msk.f32.mxu1 %vm333_vm2, %v76_v49 }
 0x169   :  { %410 = vmatmul.mubr.f32.gmra.mrb[2].mxu1 %v75_v50 }
 0x16a   :  { %653 = vmatprep.mubr.msk.f32.mxu1 %vm792_vm0, %v793_v1 }
 0x238   :  { %v406_v51 = vpop.f32.mrb[0].mxu1 }
 0x239   :  { %v408_v52 = vpop.f32.mrb[1].mxu1  ;;  %v415_v54 = vmax.f32 %v406_v51, 0.0 }
 0x23c   :  { %v411_v53 = vpop.f32.mrb[2].mxu1 }
 0x23d   :  { %v416_v55 = vmax.f32 %v411_v53, 0.0  ;;  %v413_v56 = vpop.f32.mrb[3].mxu1 }
 0x23f   :  { %v699_v57 = vpack.c.bf16 %v416_v55, %v415_v54 }
 0x241   :  { %700 = vmatpush3.bf16.msra.mxu1 %v699_v57 }
 0x244   :  { %654 = vmatmul.mubr.msk.f32.vlgmr.msra.gmra.mrb[4].mxu1 %vm418_vm3, %v77_v58 }
 0x317   :  { %v488_v59 = vpop.f32.mrb[4].mxu1 }
 0x318   :  { %v489_v60 = vadd.f32 %v488_v59, %v417_v0  ;;  %v655_v61 = vpop.f32.mrb[5].mxu1 }
 0x31a   :  { %711 = vtanh.f32 %v489_v60 }
 0x324   :  { %v712_v1 = vpop.eup %711 }
 0x325   :  { %v493_v62 = vmul.f32 1.5, %v712_v1 }
 0x327   :  { %494 = vst [vmem:[#allocation7] sm:$0x1] %v493_v62 }
 0x328   :  { %768 = shalt.err (!%p765_p6)
}
 0x329   :  { %s769_s18 = scalar_lea.hbm %s941_s3, 16 }
 0x32a   :  { %p770_p7 = scmp.ne.s32.totalorder %s941_s3, %s769_s18  ;;  %p773_p8 = scmp.lt.u32.totalorder %s769_s18, %s941_s3 }
 0x32c   :  { %p775_p9 = pnand %p773_p8, %p770_p7 }
 0x32e   :  { %778 = shalt.err (!%p775_p9)
}
 0x32f   :  { %504 = dma.vmem_to_hbm [thread:$0]  %s502_s14, 16, %s941_s3, [#allocation4]  }
 0x330   :  { %783 = dma.done.wait [#allocation4], 16  }
 0x331   :  { %784 = vsyncadd [#allocation4], 4294967280 }
 0x332   :  { %508 = vsyncpa [#allocation3], 1 }
 0x333   :  { %509 = vsyncpa [#allocation6], 1 }
 0x334   :  { %510 = vsyncpa [#allocation4], 1 }

</bundles_post_ra>
